<compile_context>
chip_gen: v5e
topology: v5e:2x2
jax: 0.10.0
libtpu: 0.0.40
codegen_flags: <defaults>
</compile_context>

<pallas_src>
import jax
import jax.numpy as jnp
from jax.experimental import pallas as pl
from jax.experimental.pallas import tpu as pltpu

_LANES = 128


def _round_up(x, m):
    return ((x + m - 1) // m) * m


def _esmm_bce_kernel(pred_ref, label_ref, out_ref):
    # pred_ref : (2, TILE_R, 128) float  -- [ctr; cvr] predicted probabilities
    # label_ref: (2, TILE_R, 128) int8   -- [click; convert] hard {0,1} labels
    # out_ref  : (1, 8, 128) float32     -- this grid step's partial sums
    p = pred_ref[...].astype(jnp.float32)
    y = label_ref[...].astype(jnp.float32)

    # Hard-label BCE with PyTorch's -100 log clamp:
    #   loss = -max(log(p if y==1 else 1-p), -100)
    # NOTE: valid only for labels in {0, 1} (the module's actual usage);
    # soft targets would need the full y*log(p) + (1-y)*log(1-p) form.
    q = jnp.where(y > 0.5, p, 1.0 - p)
    elem = -jnp.maximum(jnp.log(q), -100.0)          # (2, TILE_R, 128)

    # Fold to (8, 128) with element-wise VPU adds only (TILE_R % 8 == 0, so
    # the reshape does not cross (8, 128) tile boundaries).  The cross-lane /
    # cross-sublane reduce happens once, in the wrapper.
    folded = elem.reshape(-1, 8, _LANES).sum(axis=0)  # (8, 128) f32
    out_ref[...] = folded[None, :, :]


def esmm_loss(ctr_pred, cvr_pred, click, convert, *, max_tile_r=512):
    """ESMM loss = mean BCE(ctr_pred, click) + mean BCE(cvr_pred, convert)."""
    # Glue: squeeze like .squeeze(), flatten to 1-D.
    ctr = jnp.squeeze(ctr_pred).reshape(-1)
    cvr = jnp.squeeze(cvr_pred).reshape(-1)
    clk = click.reshape(-1)
    cvt = convert.reshape(-1)
    n = ctr.shape[0]
    assert cvr.shape[0] == n and clk.shape[0] == n and cvt.shape[0] == n

    pred_dtype = jnp.promote_types(ctr.dtype, cvr.dtype)
    if not jnp.issubdtype(pred_dtype, jnp.floating):
        pred_dtype = jnp.float32

    # Tile geometry: rows of 128 lanes, tile height a multiple of 32 (so the
    # int8 label block also satisfies its (32, 128) packing), tiles <= 512
    # rows (512*128*4 B = 256 KiB per head per block; ~1.3 MiB double-buffered
    # total -- comfortably under the scoped VMEM limit on v5e/v6e/v7x).
    max_tile_r = _round_up(max(int(max_tile_r), 32), 32)
    r_needed = -(-n // _LANES)
    tile_r = min(max_tile_r, _round_up(max(r_needed, 1), 32))
    r_total = _round_up(max(r_needed, 1), tile_r)
    padded = r_total * _LANES
    grid = r_total // tile_r

    preds = jnp.stack([ctr.astype(pred_dtype), cvr.astype(pred_dtype)])  # (2, n)
    labels = jnp.stack([clk, cvt]).astype(jnp.int8)                      # (2, n)

    # Pad with (pred=1, label=1): -max(log(1), -100) == 0, i.e. exactly zero
    # contribution, so no explicit mask is needed.
    if padded != n:
        pad = padded - n
        preds = jnp.pad(preds, ((0, 0), (0, pad)), constant_values=1)
        labels = jnp.pad(labels, ((0, 0), (0, pad)), constant_values=1)

    preds = preds.reshape(2, r_total, _LANES)
    labels = labels.reshape(2, r_total, _LANES)

    partials = pl.pallas_call(
        _esmm_bce_kernel,
        out_shape=jax.ShapeDtypeStruct((grid, 8, _LANES), jnp.float32),
        grid=(grid,),
        in_specs=[
            pl.BlockSpec((2, tile_r, _LANES), lambda i: (0, i, 0)),
            pl.BlockSpec((2, tile_r, _LANES), lambda i: (0, i, 0)),
        ],
        out_specs=pl.BlockSpec((1, 8, _LANES), lambda i: (i, 0, 0)),
        compiler_params=pltpu.CompilerParams(
            dimension_semantics=("parallel",)),
    )(preds, labels)

    # Final tiny reduction + single divide: (sum_ctr + sum_cvr) / n equals
    # mean-BCE(ctr) + mean-BCE(cvr) because both heads share the same n.
    return jnp.sum(partials) / jnp.float32(n)


def _reference_esmm_loss(ctr_pred, cvr_pred, click, convert):
    """Pure-JAX reference matching nn.BCELoss semantics (mean, log clamp -100)."""
    def bce(p, y):
        p = jnp.squeeze(p).astype(jnp.float32)
        y = y.astype(jnp.float32)
        log_p = jnp.maximum(jnp.log(p), -100.0)
        log_1mp = jnp.maximum(jnp.log(1.0 - p), -100.0)
        return jnp.mean(-(y * log_p + (1.0 - y) * log_1mp))
    return bce(ctr_pred, click) + bce(cvr_pred, convert)


if __name__ == "__main__":
    # ESMMLoss has no learnable parameters; only construct inputs.
    keys = jax.random.split(jax.random.PRNGKey(0), 8)

    # --- Small case (matches the module's usage): batch=8, preds (batch, 1) ---
    batch = 8
    ctr_pred = jax.nn.sigmoid(jax.random.normal(keys[0], (batch, 1), dtype=jnp.float32))
    cvr_pred = jax.nn.sigmoid(jax.random.normal(keys[1], (batch, 1), dtype=jnp.float32))
    click = (jax.random.uniform(keys[2], (batch,)) < 0.5).astype(jnp.int32)
    convert = (jax.random.uniform(keys[3], (batch,)) < 0.3).astype(jnp.int32)

    loss = jax.block_until_ready(esmm_loss(ctr_pred, cvr_pred, click, convert))
    ref = _reference_esmm_loss(ctr_pred, cvr_pred, click, convert)
    assert jnp.allclose(loss, ref, rtol=1e-5, atol=1e-5), (loss, ref)

    # --- Second check: non-multiple-of-128 batch + multi-step parallel grid ---
    batch2 = 5000
    ctr2 = jax.nn.sigmoid(jax.random.normal(keys[4], (batch2, 1), dtype=jnp.float32))
    cvr2 = jax.nn.sigmoid(jax.random.normal(keys[5], (batch2, 1), dtype=jnp.float32))
    clk2 = (jax.random.uniform(keys[6], (batch2,)) < 0.5).astype(jnp.int32)
    cvt2 = (jax.random.uniform(keys[7], (batch2,)) < 0.3).astype(jnp.int32)

    loss2 = jax.block_until_ready(
        esmm_loss(ctr2, cvr2, clk2, cvt2, max_tile_r=32))  # forces grid > 1
    ref2 = _reference_esmm_loss(ctr2, cvr2, clk2, cvt2)
    assert jnp.allclose(loss2, ref2, rtol=1e-5, atol=1e-5), (loss2, ref2)

    print("KERNEL_OK")
</pallas_src>

<mosaic_0001>
module attributes {stable_mosaic.version = 11 : i64} {
  func.func @_esmm_bce_kernel(%arg0: i32, %arg1: memref<2x32x128xf32, #tpu.memory_space<vmem>>, %arg2: memref<2x32x128xi8, #tpu.memory_space<vmem>>, %arg3: memref<1x8x128xf32, #tpu.memory_space<vmem>>) attributes {dimension_semantics = [#tpu.dimension_semantics<parallel>], iteration_bounds = array<i64: 1>, scalar_prefetch = 0 : i64, scratch_operands = 0 : i64, tpu.core_type = #tpu.core_type<tc>, window_params = [{transform_indices = @transform_0, window_bounds = array<i64: 2, 32, 128>}, {transform_indices = @transform_1, window_bounds = array<i64: 2, 32, 128>}, {transform_indices = @transform_2, window_bounds = array<i64: 1, 8, 128>}]} {
    %c0 = arith.constant 0 : index
    %c0_0 = arith.constant 0 : index
    %c0_1 = arith.constant 0 : index
    %0 = vector.load %arg1[%c0, %c0_0, %c0_1] : memref<2x32x128xf32, #tpu.memory_space<vmem>>, vector<2x32x128xf32>
    %c0_2 = arith.constant 0 : index
    %c0_3 = arith.constant 0 : index
    %c0_4 = arith.constant 0 : index
    %1 = vector.load %arg2[%c0_2, %c0_3, %c0_4] : memref<2x32x128xi8, #tpu.memory_space<vmem>>, vector<2x32x128xi8>
    %2 = arith.sitofp %1 : vector<2x32x128xi8> to vector<2x32x128xf32>
    %cst = arith.constant 5.000000e-01 : f32
    %3 = vector.broadcast %cst : f32 to vector<2x32x128xf32>
    %4 = arith.cmpf ogt, %2, %3 : vector<2x32x128xf32>
    %cst_5 = arith.constant 1.000000e+00 : f32
    %5 = vector.broadcast %cst_5 : f32 to vector<2x32x128xf32>
    %6 = arith.subf %5, %0 : vector<2x32x128xf32>
    %7 = arith.select %4, %0, %6 : vector<2x32x128xi1>, vector<2x32x128xf32>
    %8 = math.log %7 : vector<2x32x128xf32>
    %cst_6 = arith.constant -1.000000e+02 : f32
    %9 = vector.broadcast %cst_6 : f32 to vector<2x32x128xf32>
    %10 = arith.maximumf %8, %9 : vector<2x32x128xf32>
    %cst_7 = arith.constant 0.000000e+00 : f32
    %11 = vector.broadcast %cst_7 : f32 to vector<2x32x128xf32>
    %12 = arith.subf %11, %10 : vector<2x32x128xf32>
    %13 = vector.shape_cast %12 : vector<2x32x128xf32> to vector<8x8x128xf32>
    %cst_8 = arith.constant dense<0.000000e+00> : vector<8x128xf32>
    %14 = vector.multi_reduction <add>, %13, %cst_8 [0] : vector<8x8x128xf32> to vector<8x128xf32>
    %15 = vector.shape_cast %14 : vector<8x128xf32> to vector<1x8x128xf32>
    %c0_9 = arith.constant 0 : index
    %c0_10 = arith.constant 0 : index
    %c0_11 = arith.constant 0 : index
    %16 = vector.load %arg3[%c0_9, %c0_10, %c0_11] : memref<1x8x128xf32, #tpu.memory_space<vmem>>, vector<1x8x128xf32>
    tpu.vector_store %arg3[%c0_9, %c0_10, %c0_11], %15 {strides = array<i32>} : memref<1x8x128xf32, #tpu.memory_space<vmem>>, vector<1x8x128xf32>,
    return
  }
  func.func @transform_0(%arg0: i32) -> (i32, i32, i32) {
    %c0_i32 = arith.constant 0 : i32
    %c0_i32_0 = arith.constant 0 : i32
    %c0_i32_1 = arith.constant 0 : i32
    return %c0_i32, %arg0, %c0_i32_0 : i32, i32, i32
  }
  func.func @transform_1(%arg0: i32) -> (i32, i32, i32) {
    %c0_i32 = arith.constant 0 : i32
    %c0_i32_0 = arith.constant 0 : i32
    %c0_i32_1 = arith.constant 0 : i32
    return %c0_i32, %arg0, %c0_i32_0 : i32, i32, i32
  }
  func.func @transform_2(%arg0: i32) -> (i32, i32, i32) {
    %c0_i32 = arith.constant 0 : i32
    %c0_i32_0 = arith.constant 0 : i32
    %c0_i32_1 = arith.constant 0 : i32
    return %arg0, %c0_i32, %c0_i32_0 : i32, i32, i32
  }
}

</mosaic_0001>

<bundles_post_ra>
// kernel: tpu_custom_call.1
= control target key start
LH: loop header
LB: loop body
LE: loop exit
PB: predicated region body
PF: predicated region fallthrough
CT: control target
= control target key end

     0   :  { %7 = vsyncpa [#allocation3], 0  ;;  %s280_s0 = inlined_call_operand.hbm [shape: f32[2,32,128], index: 0, kind: input, shape index: {}]   ;;  %s281_s1 = inlined_call_operand.hbm [shape: s8[2,32,128], index: 1, kind: input, shape index: {}]   ;;  %s282_s2 = inlined_call_operand.hbm [shape: f32[1,8,128], index: 2, kind: output, shape index: {}]  }
   0x1   :  { %8 = vsyncpa [#allocation6], 0 }
   0x2   :  { %9 = vsyncpa [#allocation4], 0  ;;  %s14_s11 = sshll.u32 %s280_s0, 4  ;;  %s251_s12 = smov [#allocation2]   ;;  %s15_s11 = int_to_ptr.hbm [resolvable:$true] %s14_s11 }
   0x3   :  { %s16_s13 = sshll.u32 %s251_s12, 4  ;;  %s27_s16 = sshll.u32 %s281_s1, 4  ;;  %s17_s13 = int_to_ptr.vmem [resolvable:$true] %s16_s13  ;;  %s28_s16 = int_to_ptr.hbm [resolvable:$true] %s27_s16 }
   0x4   :  { %s252_s17 = smov 128   ;;  %s253_s18 = smov 8  }
   0x5   :  { %22 = dma.hbm_to_vmem [thread:$0]  %s15_s11, 1024, %s17_s13, [#allocation3], %s252_s17, %s252_s17, %s253_s18  }
   0x6   :  { %s254_s19 = smov [#allocation5]  }
   0x7   :  { %s29_s20 = sshll.u32 %s254_s19, 4  ;;  %s30_s20 = int_to_ptr.vmem [resolvable:$true] %s29_s20 }
   0x8   :  { %35 = dma.hbm_to_vmem [thread:$0]  %s28_s16, 256, %s30_s20, [#allocation6], %s252_s17, %s252_s17, %s253_s18  }
   0x9   :  { %245 = dma.done.wait [#allocation3], 1024  }
   0xa   :  { %246 = vsyncadd [#allocation3], 4294966272 }
   0xb   :  { %247 = dma.done.wait [#allocation6], 256  }
   0xc   :  { %248 = vsyncadd [#allocation6], 4294967040  ;;  %v44_v0 = vld [vmem:[#allocation2] sm:$0xff]  ;;  %v45_v1 = vld [vmem:[#allocation2 + $0x8] sm:$0xff]  ;;  %s255_s0 = smov [#allocation7]   ;;  %s141_s23 = sshll.u32 %s282_s2, 4  ;;  %s142_s23 = int_to_ptr.hbm [resolvable:$true] %s141_s23 }
   0xd   :  { %v52_v2 = vld [vmem:[#allocation5] sm:$0xff]  ;;  %v78_v3 = vsub.f32 1.0, %v44_v0  ;;  %v79_v4 = vsub.f32 1.0, %v45_v1  ;;  %v46_v5 = vld [vmem:[#allocation2 + $0x10] sm:$0xff]  ;;  %v47_v6 = vld [vmem:[#allocation2 + $0x18] sm:$0xff]  ;;  %s139_s1 = sshll.u32 %s255_s0, 4  ;;  %s140_s1 = int_to_ptr.vmem [resolvable:$true] %s139_s1 }
   0xe   :  { %v53_v7 = vld [vmem:[#allocation5 + $0x8] sm:$0xff]  ;;  %v54_v8 = vunpack.c.0.s8 %v52_v2  ;;  %v55_v9 = vunpack.c.1.s8 %v52_v2  ;;  %v56_v10 = vunpack.c.2.s8 %v52_v2  ;;  %v57_v11 = vunpack.c.3.s8 %v52_v2  ;;  %v48_v16 = vld [vmem:[#allocation2 + $0x20] sm:$0xff]  ;;  %v50_v26 = vld [vmem:[#allocation2 + $0x30] sm:$0xff] }
   0xf   :  { %v58_v12 = vunpack.c.0.s8 %v53_v7  ;;  %v59_v13 = vunpack.c.1.s8 %v53_v7  ;;  %v60_v14 = vunpack.c.2.s8 %v53_v7  ;;  %v61_v15 = vunpack.c.3.s8 %v53_v7  ;;  %v49_v21 = vld [vmem:[#allocation2 + $0x28] sm:$0xff]  ;;  %v51_v28 = vld [vmem:[#allocation2 + $0x38] sm:$0xff] }
  0x10   :  { %v62_v17 = vcvt.s32.f32 %v54_v8  ;;  %v63_v18 = vcvt.s32.f32 %v55_v9  ;;  %v64_v19 = vcvt.s32.f32 %v56_v10  ;;  %v65_v20 = vcvt.s32.f32 %v57_v11 }
  0x11   :  { %v66_v22 = vcvt.s32.f32 %v58_v12  ;;  %v67_v23 = vcvt.s32.f32 %v59_v13  ;;  %v80_v24 = vsub.f32 1.0, %v46_v5  ;;  %v81_v25 = vsub.f32 1.0, %v47_v6 }
  0x12   :  { %v68_v27 = vcvt.s32.f32 %v60_v14  ;;  %vm70_vm0 = vcmp.gt.f32.partialorder %v62_v17, 0.5  ;;  %vm71_vm1 = vcmp.gt.f32.partialorder %v63_v18, 0.5  ;;  %vm72_vm2 = vcmp.gt.f32.partialorder %v64_v19, 0.5 }
  0x13   :  { %v69_v29 = vcvt.s32.f32 %v61_v15  ;;  %vm73_vm3 = vcmp.gt.f32.partialorder %v65_v20, 0.5  ;;  %v82_v30 = vsub.f32 1.0, %v48_v16  ;;  %vm74_vm4 = vcmp.gt.f32.partialorder %v66_v22, 0.5 }
  0x14   :  { %v83_v31 = vsub.f32 1.0, %v49_v21  ;;  %v86_v32 = vsel %vm70_vm0, %v44_v0, %v78_v3  ;;  %v87_v33 = vsel %vm71_vm1, %v45_v1, %v79_v4  ;;  %vm75_vm5 = vcmp.gt.f32.partialorder %v67_v23, 0.5 }
  0x15   :  { %v84_v34 = vsub.f32 1.0, %v50_v26  ;;  %v88_v35 = vsel %vm72_vm2, %v46_v5, %v80_v24  ;;  %vm76_vm6 = vcmp.gt.f32.partialorder %v68_v27, 0.5  ;;  %v85_v36 = vsub.f32 1.0, %v51_v28 }
  0x16   :  { %v89_v37 = vsel %vm73_vm3, %v47_v6, %v81_v25  ;;  %157 = vlog2.f32 %v86_v32  ;;  %vm77_vm7 = vcmp.gt.f32.partialorder %v69_v29, 0.5  ;;  %v90_v38 = vsel %vm74_vm4, %v48_v16, %v82_v30 }
  0x17   :  { %159 = vlog2.f32 %v87_v33  ;;  %v91_v39 = vsel %vm75_vm5, %v49_v21, %v83_v31  ;;  %v92_v40 = vsel %vm76_vm6, %v50_v26, %v84_v34  ;;  %v93_v41 = vsel %vm77_vm7, %v51_v28, %v85_v36 }
  0x18   :  { %161 = vlog2.f32 %v88_v35 }
  0x19   :  { %163 = vlog2.f32 %v89_v37 }
  0x1a   :  { %165 = vlog2.f32 %v90_v38 }
  0x1b   :  { %167 = vlog2.f32 %v91_v39 }
  0x1c   :  { %v158_v42 = vpop.eup %157  ;;  %169 = vlog2.f32 %v92_v40 }
  0x1d   :  { %v160_v43 = vpop.eup %159  ;;  %v95_v44 = vmul.f32 0.6931472, %v158_v42  ;;  %171 = vlog2.f32 %v93_v41 }
  0x1e   :  { %v162_v45 = vpop.eup %161  ;;  %v97_v46 = vmul.f32 0.6931472, %v160_v43 }
  0x1f   :  { %v164_v47 = vpop.eup %163  ;;  %v99_v48 = vmul.f32 0.6931472, %v162_v45  ;;  %v110_v49 = vmax.f32 %v95_v44, -100.0 }
  0x20   :  { %v166_v50 = vpop.eup %165  ;;  %v101_v51 = vmul.f32 0.6931472, %v164_v47  ;;  %v111_v52 = vmax.f32 %v97_v46, -100.0 }
  0x21   :  { %v168_v53 = vpop.eup %167  ;;  %v103_v54 = vmul.f32 0.6931472, %v166_v50  ;;  %v112_v55 = vmax.f32 %v99_v48, -100.0  ;;  %v118_v56 = vsub.f32 0.0, %v110_v49 }
  0x22   :  { %v170_v57 = vpop.eup %169  ;;  %v105_v58 = vmul.f32 0.6931472, %v168_v53  ;;  %v113_v59 = vmax.f32 %v101_v51, -100.0  ;;  %v119_v60 = vsub.f32 0.0, %v111_v52 }
  0x23   :  { %v172_v61 = vpop.eup %171  ;;  %v107_v62 = vmul.f32 0.6931472, %v170_v57  ;;  %v114_v63 = vmax.f32 %v103_v54, -100.0  ;;  %v120_v0 = vsub.f32 0.0, %v112_v55 }
  0x24   :  { %v109_v1 = vmul.f32 0.6931472, %v172_v61  ;;  %v115_v2 = vmax.f32 %v105_v58, -100.0  ;;  %v121_v3 = vsub.f32 0.0, %v113_v59  ;;  %v126_v4 = vadd.f32 %v119_v60, %v118_v56 }
  0x25   :  { %v116_v5 = vmax.f32 %v107_v62, -100.0  ;;  %v122_v6 = vsub.f32 0.0, %v114_v63 }
  0x26   :  { %v127_v7 = vadd.f32 %v126_v4, %v120_v0  ;;  %v117_v8 = vmax.f32 %v109_v1, -100.0  ;;  %v123_v9 = vsub.f32 0.0, %v115_v2 }
  0x27   :  { %v124_v11 = vsub.f32 0.0, %v116_v5 }
  0x28   :  { %v128_v10 = vadd.f32 %v127_v7, %v121_v3  ;;  %v125_v13 = vsub.f32 0.0, %v117_v8 }
  0x2a   :  { %v129_v12 = vadd.f32 %v128_v10, %v122_v6 }
  0x2c   :  { %v130_v14 = vadd.f32 %v129_v12, %v123_v9 }
  0x2e   :  { %v131_v15 = vadd.f32 %v130_v14, %v124_v11 }
  0x30   :  { %v132_v16 = vadd.f32 %v131_v15, %v125_v13 }
  0x32   :  { %133 = vst [vmem:[#allocation7] sm:$0xff] %v132_v16 }
  0x33   :  { %144 = dma.vmem_to_hbm [thread:$0]  %s140_s1, 128, %s142_s23, [#allocation4]  }
  0x34   :  { %249 = dma.done.wait [#allocation4], 128  }
  0x35   :  { %250 = vsyncadd [#allocation4], 4294967168 }
  0x36   :  { %149 = vsyncpa [#allocation3], 1 }
  0x37   :  { %150 = vsyncpa [#allocation6], 1 }
  0x38   :  { %151 = vsyncpa [#allocation4], 1 }

</bundles_post_ra>
